<compile_context>
chip_gen: v6e
topology: v6e:2x2x1
jax: 0.10.0
libtpu: 0.0.40
codegen_flags: <defaults>
</compile_context>

<pallas_src>
import functools

import jax
import jax.numpy as jnp
from jax.experimental import pallas as pl
from jax.experimental.pallas import tpu as pltpu


def _round_up(v, m):
    return (v + m - 1) // m * m


def _cdiv(a, b):
    return (a + b - 1) // b


def _sac_actor_kernel(x_ref, w1_ref, b1_ref, w2_ref, b2_ref, w3_ref, b3_ref,
                      out_ref):
    # x arrives f32; cast to bf16 in-kernel so the wrapper never materializes
    # a bf16 copy of the activations.
    x = x_ref[...].astype(jnp.bfloat16)
    # fc_1 + ReLU   (bf16 operands, f32 MXU accumulation, f32 bias add)
    h = jnp.dot(x, w1_ref[...],
                preferred_element_type=jnp.float32) + b1_ref[...]
    h = jnp.maximum(h, 0.0)
    # fc_2 + ReLU   (hidden_layer_size=2 -> exactly one extra hidden Linear)
    h = jnp.dot(h.astype(jnp.bfloat16), w2_ref[...],
                preferred_element_type=jnp.float32) + b2_ref[...]
    h = jnp.maximum(h, 0.0)
    # head: Linear(node_size, 2*action_size) padded to 128 lanes, no nonlin
    out = jnp.dot(h.astype(jnp.bfloat16), w3_ref[...],
                  preferred_element_type=jnp.float32) + b3_ref[...]
    out_ref[...] = out.astype(out_ref.dtype)     # bf16 store, full 128 lanes


def prepare_params(w1, b1, w2, b2, w3, b3):
    """One-time parameter preparation; call once and reuse every forward.

    * weights -> bf16 (f32 accumulation still happens on the MXU in-kernel)
    * head weight/bias zero-padded to a multiple of 128 output lanes
    * biases kept f32 (added after the f32 accumulation)
    Returns (prepared_param_tuple, out_dim).
    """
    out_dim = w3.shape[1]
    out_pad = _round_up(out_dim, 128)
    if out_pad != out_dim:
        w3 = jnp.pad(w3, ((0, 0), (0, out_pad - out_dim)))
        b3 = jnp.pad(b3, ((0, 0), (0, out_pad - out_dim)))
    prepared = (w1.astype(jnp.bfloat16), b1.astype(jnp.float32),
                w2.astype(jnp.bfloat16), b2.astype(jnp.float32),
                w3.astype(jnp.bfloat16), b3.astype(jnp.float32))
    return prepared, out_dim


def _choose_tiling(B):
    """Pick (TM, B_pad):
    * >= 2 tiles for mid/large batches so the "parallel" batch axis can shard
      across v7x's two TensorCores (harmless single loop on v5e/v6e),
    * near-full last tile (minimal padding waste),
    * TM capped at 512 (per-grid-step overhead amortized; VMEM ~3 MiB),
    * TM and B_pad 16-row aligned for clean bf16 (16,128) vreg packing.
    """
    n_tiles = max(_cdiv(B, 512), 2 if B > 16 else 1)
    tm = _round_up(_cdiv(B, n_tiles), 16)
    b_pad = _round_up(B, tm)
    return tm, b_pad


@functools.partial(jax.jit, static_argnames=("out_dim",))
def sac_actor_forward(x, w1, b1, w2, b2, w3, b3, *, out_dim):
    """Fused SACActor.forward. x: (B, obs_size) f32 -> (B, 2*action_size) f32.

    Parameters must come from prepare_params (bf16 weights, head padded to a
    multiple of 128 lanes).
    """
    B, obs = x.shape
    node = w1.shape[1]
    out_pad = w3.shape[1]

    tm, b_pad = _choose_tiling(B)
    xp = jnp.pad(x, ((0, b_pad - B), (0, 0))) if b_pad != B else x

    flops = 2 * b_pad * (obs * node + node * node + node * out_pad)
    bytes_accessed = (xp.size * 4 + w1.size * 2 + w2.size * 2 + w3.size * 2
                      + (b1.size + b2.size + b3.size) * 4
                      + b_pad * out_pad * 2)

    out = pl.pallas_call(
        _sac_actor_kernel,
        out_shape=jax.ShapeDtypeStruct((b_pad, out_pad), jnp.bfloat16),
        grid_spec=pltpu.PrefetchScalarGridSpec(
            num_scalar_prefetch=0,
            grid=(b_pad // tm,),
            in_specs=[
                # activations: tiled along the batch grid axis
                pl.BlockSpec((tm, obs), lambda i: (i, 0)),
                # weights / biases: constant block -> VMEM-resident across
                # grid steps (DMA'd once per core); default double buffer is
                # ~264 KiB total, negligible on every generation.
                pl.BlockSpec((obs, node), lambda i: (0, 0)),
                pl.BlockSpec((1, node), lambda i: (0, 0)),
                pl.BlockSpec((node, node), lambda i: (0, 0)),
                pl.BlockSpec((1, node), lambda i: (0, 0)),
                pl.BlockSpec((node, out_pad), lambda i: (0, 0)),
                pl.BlockSpec((1, out_pad), lambda i: (0, 0)),
            ],
            out_specs=pl.BlockSpec((tm, out_pad), lambda i: (i, 0)),
        ),
        compiler_params=pltpu.CompilerParams(
            dimension_semantics=("parallel",)),
        cost_estimate=pl.CostEstimate(
            flops=flops, transcendentals=0, bytes_accessed=bytes_accessed),
    )(xp, w1, b1, w2, b2, w3, b3)

    # strip batch/lane padding; cast the tiny useful slab back to f32
    return out[:B, :out_dim].astype(jnp.float32)


def init_params(key, obs_size, action_size, node_size=256, dtype=jnp.float32):
    """Deterministic synthetic parameters (PyTorch-Linear-like uniform init)."""
    ks = jax.random.split(key, 6)

    def linear(kw, kb, fan_in, fan_out):
        bound = 1.0 / (fan_in ** 0.5)
        # weight stored transposed: (in_features, out_features)
        w = jax.random.uniform(kw, (fan_in, fan_out), dtype, -bound, bound)
        b = jax.random.uniform(kb, (1, fan_out), dtype, -bound, bound)
        return w, b

    w1, b1 = linear(ks[0], ks[1], obs_size, node_size)
    w2, b2 = linear(ks[2], ks[3], node_size, node_size)
    w3, b3 = linear(ks[4], ks[5], node_size, action_size * 2)
    return w1, b1, w2, b2, w3, b3


def reference_forward_f32(x, w1, b1, w2, b2, w3, b3):
    h = jnp.maximum(x @ w1 + b1, 0.0)
    h = jnp.maximum(h @ w2 + b2, 0.0)
    return h @ w3 + b3


def reference_forward_bf16(x, w1, b1, w2, b2, w3, b3):
    """Mirrors the kernel's bf16-storage / f32-accumulation / bf16-out numerics."""
    bf16, f32 = jnp.bfloat16, jnp.float32
    h = jnp.dot(x.astype(bf16), w1.astype(bf16),
                preferred_element_type=f32) + b1
    h = jnp.maximum(h, 0.0)
    h = jnp.dot(h.astype(bf16), w2.astype(bf16),
                preferred_element_type=f32) + b2
    h = jnp.maximum(h, 0.0)
    out = jnp.dot(h.astype(bf16), w3.astype(bf16),
                  preferred_element_type=f32) + b3
    return out.astype(bf16).astype(f32)


if __name__ == "__main__":
    obs_size = 8
    action_size = 4
    node_size = 256  # module default

    key = jax.random.PRNGKey(0)
    kx, kp, kx2 = jax.random.split(key, 3)
    raw = init_params(kp, obs_size, action_size, node_size)

    # One-time parameter prep (bf16 cast + head lane-padding), off the hot path.
    params, out_dim = prepare_params(*raw)
    params = jax.block_until_ready(params)

    # small batch (typical RL actor inference step): TM=16, grid=1
    x = jax.random.normal(kx, (8, obs_size), jnp.float32)
    out = jax.block_until_ready(sac_actor_forward(x, *params, out_dim=out_dim))
    assert out.shape == (8, 2 * action_size)
    assert jnp.allclose(out, reference_forward_bf16(x, *raw),
                        atol=2e-2, rtol=2e-2)
    assert jnp.allclose(out, reference_forward_f32(x, *raw),
                        atol=1e-1, rtol=1e-1)

    # non-multiple batch exercises the 2-tile split: TM=160, grid=2, pad to 320
    x2 = jax.random.normal(kx2, (300, obs_size), jnp.float32)
    out2 = jax.block_until_ready(sac_actor_forward(x2, *params, out_dim=out_dim))
    assert out2.shape == (300, 2 * action_size)
    assert jnp.allclose(out2, reference_forward_bf16(x2, *raw),
                        atol=2e-2, rtol=2e-2)
    assert jnp.allclose(out2, reference_forward_f32(x2, *raw),
                        atol=1e-1, rtol=1e-1)

    print("KERNEL_OK")
</pallas_src>

<mosaic_0001>
module attributes {stable_mosaic.version = 11 : i64} {
  func.func @_sac_actor_kernel(%arg0: i32, %arg1: memref<16x8xf32, #tpu.memory_space<vmem>>, %arg2: memref<8x256xbf16, #tpu.memory_space<vmem>>, %arg3: memref<1x256xf32, #tpu.memory_space<vmem>>, %arg4: memref<256x256xbf16, #tpu.memory_space<vmem>>, %arg5: memref<1x256xf32, #tpu.memory_space<vmem>>, %arg6: memref<256x128xbf16, #tpu.memory_space<vmem>>, %arg7: memref<1x128xf32, #tpu.memory_space<vmem>>, %arg8: memref<16x128xbf16, #tpu.memory_space<vmem>>) attributes {dimension_semantics = [#tpu.dimension_semantics<parallel>], iteration_bounds = array<i64: 1>, scalar_prefetch = 0 : i64, scratch_operands = 0 : i64, tpu.core_type = #tpu.core_type<tc>, window_params = [{transform_indices = @transform_0, window_bounds = array<i64: 16, 8>}, {pipeline_mode = #tpu.pipeline_mode<synchronous>, transform_indices = @transform_1, window_bounds = array<i64: 8, 256>}, {pipeline_mode = #tpu.pipeline_mode<synchronous>, transform_indices = @transform_2, window_bounds = array<i64: 1, 256>}, {pipeline_mode = #tpu.pipeline_mode<synchronous>, transform_indices = @transform_3, window_bounds = array<i64: 256, 256>}, {pipeline_mode = #tpu.pipeline_mode<synchronous>, transform_indices = @transform_4, window_bounds = array<i64: 1, 256>}, {pipeline_mode = #tpu.pipeline_mode<synchronous>, transform_indices = @transform_5, window_bounds = array<i64: 256, 128>}, {pipeline_mode = #tpu.pipeline_mode<synchronous>, transform_indices = @transform_6, window_bounds = array<i64: 1, 128>}, {transform_indices = @transform_7, window_bounds = array<i64: 16, 128>}]} {
    %c0 = arith.constant 0 : index
    %c0_0 = arith.constant 0 : index
    %0 = vector.load %arg1[%c0, %c0_0] : memref<16x8xf32, #tpu.memory_space<vmem>>, vector<16x8xf32>
    %1 = arith.truncf %0 : vector<16x8xf32> to vector<16x8xbf16>
    %c0_1 = arith.constant 0 : index
    %c0_2 = arith.constant 0 : index
    %2 = vector.load %arg2[%c0_1, %c0_2] : memref<8x256xbf16, #tpu.memory_space<vmem>>, vector<8x256xbf16>
    %cst = arith.constant dense<0.000000e+00> : vector<16x256xf32>
    %3 = tpu.matmul %1, %2, %cst {dimension_numbers = #tpu.dot_dimension_numbers<[1], [0], [0], [1], [0, 0, 1, 1], [], []>} : vector<16x8xbf16>, vector<8x256xbf16>, vector<16x256xf32> -> vector<16x256xf32>
    %c0_3 = arith.constant 0 : index
    %c0_4 = arith.constant 0 : index
    %4 = vector.load %arg3[%c0_3, %c0_4] : memref<1x256xf32, #tpu.memory_space<vmem>>, vector<1x256xf32>
    %5 = vector.broadcast %4 : vector<1x256xf32> to vector<16x256xf32>
    %6 = arith.addf %3, %5 : vector<16x256xf32>
    %cst_5 = arith.constant 0.000000e+00 : f32
    %7 = vector.broadcast %cst_5 : f32 to vector<16x256xf32>
    %8 = arith.maximumf %6, %7 : vector<16x256xf32>
    %9 = arith.truncf %8 : vector<16x256xf32> to vector<16x256xbf16>
    %c0_6 = arith.constant 0 : index
    %c0_7 = arith.constant 0 : index
    %10 = vector.load %arg4[%c0_6, %c0_7] : memref<256x256xbf16, #tpu.memory_space<vmem>>, vector<256x256xbf16>
    %cst_8 = arith.constant dense<0.000000e+00> : vector<16x256xf32>
    %11 = tpu.matmul %9, %10, %cst_8 {dimension_numbers = #tpu.dot_dimension_numbers<[1], [0], [0], [1], [0, 0, 1, 1], [], []>} : vector<16x256xbf16>, vector<256x256xbf16>, vector<16x256xf32> -> vector<16x256xf32>
    %c0_9 = arith.constant 0 : index
    %c0_10 = arith.constant 0 : index
    %12 = vector.load %arg5[%c0_9, %c0_10] : memref<1x256xf32, #tpu.memory_space<vmem>>, vector<1x256xf32>
    %13 = vector.broadcast %12 : vector<1x256xf32> to vector<16x256xf32>
    %14 = arith.addf %11, %13 : vector<16x256xf32>
    %cst_11 = arith.constant 0.000000e+00 : f32
    %15 = vector.broadcast %cst_11 : f32 to vector<16x256xf32>
    %16 = arith.maximumf %14, %15 : vector<16x256xf32>
    %17 = arith.truncf %16 : vector<16x256xf32> to vector<16x256xbf16>
    %c0_12 = arith.constant 0 : index
    %c0_13 = arith.constant 0 : index
    %18 = vector.load %arg6[%c0_12, %c0_13] : memref<256x128xbf16, #tpu.memory_space<vmem>>, vector<256x128xbf16>
    %cst_14 = arith.constant dense<0.000000e+00> : vector<16x128xf32>
    %19 = tpu.matmul %17, %18, %cst_14 {dimension_numbers = #tpu.dot_dimension_numbers<[1], [0], [0], [1], [0, 0, 1, 1], [], []>} : vector<16x256xbf16>, vector<256x128xbf16>, vector<16x128xf32> -> vector<16x128xf32>
    %c0_15 = arith.constant 0 : index
    %c0_16 = arith.constant 0 : index
    %20 = vector.load %arg7[%c0_15, %c0_16] : memref<1x128xf32, #tpu.memory_space<vmem>>, vector<1x128xf32>
    %21 = vector.broadcast %20 : vector<1x128xf32> to vector<16x128xf32>
    %22 = arith.addf %19, %21 : vector<16x128xf32>
    %23 = arith.truncf %22 : vector<16x128xf32> to vector<16x128xbf16>
    %c0_17 = arith.constant 0 : index
    %c0_18 = arith.constant 0 : index
    %24 = vector.load %arg8[%c0_17, %c0_18] : memref<16x128xbf16, #tpu.memory_space<vmem>>, vector<16x128xbf16>
    tpu.vector_store %arg8[%c0_17, %c0_18], %23 {strides = array<i32>} : memref<16x128xbf16, #tpu.memory_space<vmem>>, vector<16x128xbf16>,
    return
  }
  func.func @transform_0(%arg0: i32) -> (i32, i32) {
    %c0_i32 = arith.constant 0 : i32
    %c0_i32_0 = arith.constant 0 : i32
    return %arg0, %c0_i32 : i32, i32
  }
  func.func @transform_1(%arg0: i32) -> (i32, i32) {
    %c0_i32 = arith.constant 0 : i32
    %c0_i32_0 = arith.constant 0 : i32
    %c0_i32_1 = arith.constant 0 : i32
    return %c0_i32, %c0_i32_0 : i32, i32
  }
  func.func @transform_2(%arg0: i32) -> (i32, i32) {
    %c0_i32 = arith.constant 0 : i32
    %c0_i32_0 = arith.constant 0 : i32
    %c0_i32_1 = arith.constant 0 : i32
    return %c0_i32, %c0_i32_0 : i32, i32
  }
  func.func @transform_3(%arg0: i32) -> (i32, i32) {
    %c0_i32 = arith.constant 0 : i32
    %c0_i32_0 = arith.constant 0 : i32
    %c0_i32_1 = arith.constant 0 : i32
    return %c0_i32, %c0_i32_0 : i32, i32
  }
  func.func @transform_4(%arg0: i32) -> (i32, i32) {
    %c0_i32 = arith.constant 0 : i32
    %c0_i32_0 = arith.constant 0 : i32
    %c0_i32_1 = arith.constant 0 : i32
    return %c0_i32, %c0_i32_0 : i32, i32
  }
  func.func @transform_5(%arg0: i32) -> (i32, i32) {
    %c0_i32 = arith.constant 0 : i32
    %c0_i32_0 = arith.constant 0 : i32
    %c0_i32_1 = arith.constant 0 : i32
    return %c0_i32, %c0_i32_0 : i32, i32
  }
  func.func @transform_6(%arg0: i32) -> (i32, i32) {
    %c0_i32 = arith.constant 0 : i32
    %c0_i32_0 = arith.constant 0 : i32
    %c0_i32_1 = arith.constant 0 : i32
    return %c0_i32, %c0_i32_0 : i32, i32
  }
  func.func @transform_7(%arg0: i32) -> (i32, i32) {
    %c0_i32 = arith.constant 0 : i32
    %c0_i32_0 = arith.constant 0 : i32
    return %arg0, %c0_i32 : i32, i32
  }
}

</mosaic_0001>

<bundles_post_ra>
// kernel: sac_actor_forward.1
= control target key start
LH: loop header
LB: loop body
LE: loop exit
PB: predicated region body
PF: predicated region fallthrough
CT: control target
= control target key end

     0   :  { %12 = vsyncpa [#allocation3], 0  ;;  %s856_s0 = inlined_call_operand.vmem [shape: f32[16,8], index: 0, kind: input, shape index: {}]   ;;  %s857_s1 = inlined_call_operand.vmem [shape: bf16[8,256], index: 1, kind: input, shape index: {}]   ;;  %s858_s2 = inlined_call_operand.vmem [shape: f32[1,256], index: 2, kind: input, shape index: {}]   ;;  %s859_s3 = inlined_call_operand.hbm [shape: bf16[256,256], index: 3, kind: input, shape index: {}]   ;;  %s860_s4 = inlined_call_operand.vmem [shape: f32[1,256], index: 4, kind: input, shape index: {}]   ;;  %s861_s5 = inlined_call_operand.hbm [shape: bf16[256,128], index: 5, kind: input, shape index: {}]   ;;  %s862_s6 = inlined_call_operand.vmem [shape: f32[1,128], index: 6, kind: input, shape index: {}]   ;;  %s863_s7 = inlined_call_operand.vmem [shape: bf16[16,128], index: 7, kind: output, shape index: {}]  }
   0x1   :  { %13 = vsyncpa [#allocation5], 0  ;;  %s782_s24 = smov [#allocation2]  }
   0x2   :  { %s25_s25 = sshll.u32 %s782_s24, 4  ;;  %s26_s25 = int_to_ptr.vmem [resolvable:$true] %s25_s25 }
   0x3   :  { %s746_s26 = scalar_lea.vmem %s26_s25, 4096  ;;  %p751_p1 = scmp.lt.s32.totalorder %s26_s25, %s26_s25 }
   0x4   :  { %p747_p0 = scmp.ne.s32.totalorder %s26_s25, %s746_s26  ;;  %p752_p2 = scmp.lt.s32.totalorder %s746_s26, %s746_s26 }
   0x6   :  { %p753_p3 = por %p752_p2, %p751_p1 }
   0x8   :  { %p754_p4 = pnand %p753_p3, %p747_p0 }
   0xa   :  { %757 = shalt.err (!%p754_p4)
}
   0xb   :  { %s783_s27 = smov 128   ;;  %s784_s28 = smov 8  }
   0xc   :  { %31 = dma.hbm_to_vmem [thread:$0]  %s859_s3, 4096, %s26_s25, [#allocation3], %s783_s27, %s783_s27, %s784_s28  }
   0xd   :  { %s785_s8 = smov [#allocation4]  }
   0xe   :  { %s39_s9 = sshll.u32 %s785_s8, 4  ;;  %s40_s9 = int_to_ptr.vmem [resolvable:$true] %s39_s9 }
   0xf   :  { %s766_s10 = scalar_lea.vmem %s40_s9, 2048  ;;  %p771_p6 = scmp.lt.s32.totalorder %s40_s9, %s40_s9 }
  0x10   :  { %p767_p5 = scmp.ne.s32.totalorder %s40_s9, %s766_s10  ;;  %p772_p7 = scmp.lt.s32.totalorder %s766_s10, %s766_s10 }
  0x12   :  { %p773_p8 = por %p772_p7, %p771_p6 }
  0x14   :  { %p774_p9 = pnand %p773_p8, %p767_p5 }
  0x16   :  { %777 = shalt.err (!%p774_p9)
}
  0x17   :  { %s786_s11 = smov 64   ;;  %s787_s12 = smov 4  }
  0x18   :  { %45 = dma.hbm_to_vmem [thread:$0]  %s861_s5, 2048, %s40_s9, [#allocation5], %s786_s11, %s786_s11, %s787_s12  }
  0x19   :  { %778 = dma.done.wait [#allocation3], 4096  }
  0x1a   :  { %779 = vsyncadd [#allocation3], 4294963200 }
  0x1b   :  { %780 = dma.done.wait [#allocation5], 2048  }
  0x1c   :  { %781 = vsyncadd [#allocation5], 4294965248  ;;  %v788_v0 = vmov 0   ;;  %v58_v1 = vld [vmem:[%s857_s1] sm:$0xff]  ;;  %vm80_vm0 = vcmask 1043456   ;;  %v56_v3 = vld [vmem:[%s856_s0 + $0x8] sm:$0xff]  ;;  %v61_v50 = vlaneseq }
  0x1d   :  { %119 = vmatprep.mubr.bf16.mxu0 %v788_v0  ;;  %v55_v2 = vld [vmem:[%s856_s0] sm:$0xff]  ;;  %v582_v4 = vcombine.high %v58_v1, %v58_v1  ;;  %v581_v5 = vcombine.low %v58_v1, %v58_v1  ;;  %v674_v6 = vld [vmem:[#allocation2 + $0x74] ss:$8 sps:$4 sm:$0xff]   ;;  %v676_v7 = vld [vmem:[#allocation2 + $0x70] ss:$8 sps:$4 sm:$0xff]   ;;  %vm76_vm1 = vcmask 64512  }
  0x1e   :  { %v57_v9 = vpack.c.bf16 %v56_v3, %v55_v2  ;;  %340 = vmatprep.subr.bf16.mxu1 %v674_v6  ;;  %v677_v10 = vld [vmem:[#allocation2 + $0x64] ss:$8 sps:$4 sm:$0xff]   ;;  %v679_v11 = vld [vmem:[#allocation2 + $0x60] ss:$8 sps:$4 sm:$0xff]   ;;  %v680_v12 = vld [vmem:[#allocation2 + $0x54] ss:$8 sps:$4 sm:$0xff]  }
  0x1f   :  { %583 = vmatprep.subr.msk.bf16.mxu0 %vm80_vm0, %v582_v4  ;;  %v82_v8 = vsel %vm80_vm0, %v581_v5, 0  ;;  %341 = vmatpush1.bf16.msra.mxu1 %v676_v7  ;;  %v682_v13 = vld [vmem:[#allocation2 + $0x50] ss:$8 sps:$4 sm:$0xff]   ;;  %v683_v14 = vld [vmem:[#allocation2 + $0x44] ss:$8 sps:$4 sm:$0xff]   ;;  %v62_v51 = vshrl.u32 %v61_v50, 7 }
  0x20   :  { %102 = vmatpush1.bf16.msra.mxu0 %v82_v8  ;;  %342 = vmatprep.subr.bf16.mxu1 %v677_v10  ;;  %v685_v15 = vld [vmem:[#allocation2 + $0x40] ss:$8 sps:$4 sm:$0xff]   ;;  %v686_v16 = vld [vmem:[#allocation2 + $0x34] ss:$8 sps:$4 sm:$0xff]   ;;  %v688_v17 = vld [vmem:[#allocation2 + $0x30] ss:$8 sps:$4 sm:$0xff]  }
  0x21   :  { %v689_v18 = vld [vmem:[#allocation2 + $0x24] ss:$8 sps:$4 sm:$0xff]   ;;  %v691_v19 = vld [vmem:[#allocation2 + $0x20] ss:$8 sps:$4 sm:$0xff]   ;;  %v692_v20 = vld [vmem:[#allocation2 + $0x14] ss:$8 sps:$4 sm:$0xff]  }
  0x22   :  { %v694_v21 = vld [vmem:[#allocation2 + $0x10] ss:$8 sps:$4 sm:$0xff]   ;;  %v695_v22 = vld [vmem:[#allocation2 + $0x4] ss:$8 sps:$4 sm:$0xff]   ;;  %v697_v23 = vld [vmem:[#allocation2] ss:$8 sps:$4 sm:$0xff]  }
  0x23   :  { %584 = vmatmul.mubr.msk.bf16.vlgmr.msra.gmra.mxu0 %vm76_vm1, %v57_v9  ;;  %343 = vmatpush1.bf16.msra.mxu1 %v679_v11  ;;  %v698_v24 = vld [vmem:[#allocation2 + $0xf4] ss:$8 sps:$4 sm:$0xff]   ;;  %v700_v25 = vld [vmem:[#allocation2 + $0xf0] ss:$8 sps:$4 sm:$0xff]   ;;  %v701_v26 = vld [vmem:[#allocation2 + $0xe4] ss:$8 sps:$4 sm:$0xff]  }
  0x24   :  { %344 = vmatprep.subr.bf16.mxu1 %v680_v12  ;;  %v703_v27 = vld [vmem:[#allocation2 + $0xe0] ss:$8 sps:$4 sm:$0xff]   ;;  %v704_v28 = vld [vmem:[#allocation2 + $0xd4] ss:$8 sps:$4 sm:$0xff]   ;;  %v706_v29 = vld [vmem:[#allocation2 + $0xd0] ss:$8 sps:$4 sm:$0xff]  }
  0x25   :  { %v707_v30 = vld [vmem:[#allocation2 + $0xc4] ss:$8 sps:$4 sm:$0xff]   ;;  %v709_v31 = vld [vmem:[#allocation2 + $0xc0] ss:$8 sps:$4 sm:$0xff]   ;;  %v710_v32 = vld [vmem:[#allocation2 + $0xb4] ss:$8 sps:$4 sm:$0xff]  }
  0x26   :  { %v712_v33 = vld [vmem:[#allocation2 + $0xb0] ss:$8 sps:$4 sm:$0xff]   ;;  %v713_v34 = vld [vmem:[#allocation2 + $0xa4] ss:$8 sps:$4 sm:$0xff]   ;;  %v715_v35 = vld [vmem:[#allocation2 + $0xa0] ss:$8 sps:$4 sm:$0xff]  }
  0x27   :  { %345 = vmatpush1.bf16.msra.mxu1 %v682_v13  ;;  %v716_v36 = vld [vmem:[#allocation2 + $0x94] ss:$8 sps:$4 sm:$0xff]   ;;  %v718_v37 = vld [vmem:[#allocation2 + $0x90] ss:$8 sps:$4 sm:$0xff]   ;;  %v719_v38 = vld [vmem:[#allocation2 + $0x84] ss:$8 sps:$4 sm:$0xff]  }
  0x28   :  { %346 = vmatprep.subr.bf16.mxu1 %v683_v14  ;;  %v721_v39 = vld [vmem:[#allocation2 + $0x80] ss:$8 sps:$4 sm:$0xff]   ;;  %v722_v40 = vld [vmem:[#allocation4 + $0x78] sm:$0xff]   ;;  %v724_v42 = vld [vmem:[#allocation4 + $0x70] sm:$0xff]   ;;  %v67_v52 = vsub.s32 1, %v62_v51  ;;  %v63_v53 = vsub.s32 0, %v62_v51 }
  0x29   :  { %v723_v41 = vld [vmem:[#allocation4 + $0x38] sm:$0xff]   ;;  %643 = vmatprep.subr.bf16.mxu0 %v722_v40  ;;  %v725_v43 = vld [vmem:[#allocation4 + $0x30] sm:$0xff]   ;;  %v726_v44 = vld [vmem:[#allocation4 + $0x68] sm:$0xff]  }
  0x2a   :  { %644 = vmatpush3.bf16.msra.mxu0 %v723_v41  ;;  %v727_v45 = vld [vmem:[#allocation4 + $0x28] sm:$0xff]   ;;  %v728_v46 = vld [vmem:[#allocation4 + $0x60] sm:$0xff]   ;;  %v730_v48 = vld [vmem:[#allocation4 + $0x58] sm:$0xff]  }
  0x2b   :  { %347 = vmatpush1.bf16.msra.mxu1 %v685_v15  ;;  %645 = vmatprep.subr.bf16.mxu0 %v724_v42  ;;  %v729_v47 = vld [vmem:[#allocation4 + $0x20] sm:$0xff]   ;;  %v731_v49 = vld [vmem:[#allocation4 + $0x18] sm:$0xff]   ;;  %v732_v7 = vld [vmem:[#allocation4 + $0x50] sm:$0xff]  }
  0x2c   :  { %348 = vmatprep.subr.bf16.mxu1 %v686_v16  ;;  %v59_v54 = vld [vmem:[%s858_s2] sm:$0x3]  ;;  %v733_v8 = vld [vmem:[#allocation4 + $0x10] sm:$0xff]   ;;  %v734_v9 = vld [vmem:[#allocation4 + $0x48] sm:$0xff]  }
  0x2d   :  { %v68_v56 = vrot.slane %v59_v54, %v67_v52  ;;  %v64_v57 = vrot.slane %v59_v54, %v63_v53  ;;  %v735_v10 = vld [vmem:[#allocation4 + $0x8] sm:$0xff]   ;;  %v736_v11 = vld [vmem:[#allocation4 + $0x40] sm:$0xff]  }
  0x2e   :  { %646 = vmatpush3.bf16.msra.mxu0 %v725_v43  ;;  %v737_v12 = vld [vmem:[#allocation4] sm:$0xff]  }
  0x2f   :  { %349 = vmatpush1.bf16.msra.mxu1 %v688_v17  ;;  %647 = vmatprep.subr.bf16.mxu0 %v726_v44  ;;  %v168_v13 = vld [vmem:[%s860_s4] sm:$0x3] }
  0x30   :  { %350 = vmatprep.subr.bf16.mxu1 %v689_v18  ;;  %v177_v15 = vrot.slane %v168_v13, %v67_v52  ;;  %v173_v16 = vrot.slane %v168_v13, %v63_v53 }
  0x32   :  { %648 = vmatpush3.bf16.msra.mxu0 %v727_v45 }
  0x33   :  { %351 = vmatpush1.bf16.msra.mxu1 %v691_v19  ;;  %649 = vmatprep.subr.bf16.mxu0 %v728_v46 }
  0x34   :  { %352 = vmatprep.subr.bf16.mxu1 %v692_v20 }
  0x36   :  { %650 = vmatpush3.bf16.msra.mxu0 %v729_v47 }
  0x37   :  { %353 = vmatpush1.bf16.msra.mxu1 %v694_v21  ;;  %651 = vmatprep.subr.bf16.mxu0 %v730_v48 }
  0x38   :  { %354 = vmatprep.subr.bf16.mxu1 %v695_v22 }
  0x3a   :  { %652 = vmatpush3.bf16.msra.mxu0 %v731_v49 }
  0x3b   :  { %355 = vmatpush1.bf16.msra.mxu1 %v697_v23  ;;  %653 = vmatprep.subr.bf16.mxu0 %v732_v7 }
  0x3c   :  { %356 = vmatprep.subr.bf16.mxu1 %v698_v24 }
  0x3e   :  { %654 = vmatpush3.bf16.msra.mxu0 %v733_v8 }
  0x3f   :  { %357 = vmatpush2.bf16.msra.mxu1 %v700_v25  ;;  %655 = vmatprep.subr.bf16.mxu0 %v734_v9 }
  0x40   :  { %358 = vmatprep.subr.bf16.mxu1 %v701_v26 }
  0x42   :  { %656 = vmatpush3.bf16.msra.mxu0 %v735_v10 }
  0x43   :  { %359 = vmatpush2.bf16.msra.mxu1 %v703_v27  ;;  %657 = vmatprep.subr.bf16.mxu0 %v736_v11 }
  0x44   :  { %360 = vmatprep.subr.bf16.mxu1 %v704_v28 }
  0x46   :  { %658 = vmatpush3.bf16.msra.mxu0 %v737_v12 }
  0x47   :  { %361 = vmatpush2.bf16.msra.mxu1 %v706_v29 }
  0x48   :  { %362 = vmatprep.subr.bf16.mxu1 %v707_v30 }
  0x4b   :  { %363 = vmatpush2.bf16.msra.mxu1 %v709_v31 }
  0x4c   :  { %364 = vmatprep.subr.bf16.mxu1 %v710_v32 }
  0x4f   :  { %365 = vmatpush2.bf16.msra.mxu1 %v712_v33 }
  0x50   :  { %366 = vmatprep.subr.bf16.mxu1 %v713_v34  ;;  %v617_v34 = vld [vmem:[%s862_s6] ss:$0 sm:$0xff] }
  0x53   :  { %367 = vmatpush2.bf16.msra.mxu1 %v715_v35 }
  0x54   :  { %368 = vmatprep.subr.bf16.mxu1 %v716_v36 }
  0x57   :  { %369 = vmatpush2.bf16.msra.mxu1 %v718_v37 }
  0x58   :  { %370 = vmatprep.subr.bf16.mxu1 %v719_v38 }
  0x5b   :  { %371 = vmatpush2.bf16.msra.mxu1 %v721_v39 }
  0xe3   :  { %v121_v55 = vpop.f32.mrf.mxu0 }
  0xe4   :  { %v122_v62 = vadd.f32 %v121_v55, %v64_v57 }
  0xe5   :  { %v123_v58 = vpop.f32.mrf.mxu0 }
  0xe6   :  { %v124_v60 = vadd.f32 %v123_v58, %v68_v56  ;;  %v130_v4 = vmax.f32 %v122_v62, 0.0 }
  0xe7   :  { %v125_v59 = vpop.f32.mrf.mxu0 }
  0xe8   :  { %v126_v61 = vadd.f32 %v125_v59, %v64_v57  ;;  %v131_v2 = vmax.f32 %v124_v60, 0.0 }
  0xe9   :  { %v127_v63 = vpop.f32.mrf.mxu0 }
  0xea   :  { %v128_v0 = vadd.f32 %v127_v63, %v68_v56  ;;  %v132_v1 = vmax.f32 %v126_v61, 0.0 }
  0xec   :  { %v133_v3 = vmax.f32 %v128_v0, 0.0  ;;  %v134_v6 = vpack.c.bf16 %v132_v1, %v130_v4 }
  0xee   :  { %v135_v5 = vpack.c.bf16 %v133_v3, %v131_v2 }
  0xf0   :  { %372 = vmatprep.mubr.bf16.mxu1 %v135_v5 }
  0xf1   :  { %373 = vmatmul.mubr.bf16.vlgmr.msra.gmra.mxu1 %v134_v6 }
 0x1b1   :  { %v374_v14 = vpop.f32.mrf.mxu1 }
 0x1b2   :  { %v375_v21 = vadd.f32 %v374_v14, %v173_v16 }
 0x1b3   :  { %v376_v17 = vpop.f32.mrf.mxu1 }
 0x1b4   :  { %v377_v19 = vadd.f32 %v376_v17, %v177_v15  ;;  %v383_v27 = vmax.f32 %v375_v21, 0.0 }
 0x1b5   :  { %v378_v18 = vpop.f32.mrf.mxu1 }
 0x1b6   :  { %v379_v20 = vadd.f32 %v378_v18, %v173_v16  ;;  %v384_v25 = vmax.f32 %v377_v19, 0.0 }
 0x1b7   :  { %v380_v22 = vpop.f32.mrf.mxu1 }
 0x1b8   :  { %v381_v23 = vadd.f32 %v380_v22, %v177_v15  ;;  %v385_v24 = vmax.f32 %v379_v20, 0.0 }
 0x1ba   :  { %v386_v26 = vmax.f32 %v381_v23, 0.0  ;;  %v387_v29 = vpack.c.bf16 %v385_v24, %v383_v27 }
 0x1bc   :  { %v388_v28 = vpack.c.bf16 %v386_v26, %v384_v25 }
 0x1be   :  { %556 = vmatprep.mubr.bf16.mxu0 %v388_v28 }
 0x1bf   :  { %557 = vmatmul.mubr.bf16.vlgmr.msra.gmra.mxu0 %v387_v29 }
 0x27f   :  { %v659_v30 = vpop.f32.mrf.mxu0 }
 0x281   :  { %v660_v31 = vpop.f32.mrf.mxu0 }
 0x282   :  { %v661_v33 = vadd.f32 %v660_v31, %v659_v30 }
 0x283   :  { %v662_v32 = vpop.f32.mrf.mxu0 }
 0x284   :  { %v559_v37 = vadd.f32 %v661_v33, %v617_v34 }
 0x285   :  { %v663_v35 = vpop.f32.mrf.mxu0 }
 0x286   :  { %v664_v36 = vadd.f32 %v663_v35, %v662_v32 }
 0x288   :  { %v562_v38 = vadd.f32 %v664_v36, %v617_v34 }
 0x28a   :  { %v641_v39 = vpack.c.bf16 %v562_v38, %v559_v37 }
 0x28c   :  { %642 = vst [vmem:[%s863_s7] sm:$0xff] %v641_v39  }
 0x28d   :  { %579 = vsyncpa [#allocation3], 1 }
 0x28e   :  { %580 = vsyncpa [#allocation5], 1 }

</bundles_post_ra>
